<compile_context>
chip_gen: v7x
topology: tpu7x:2x2x1
jax: 0.10.0
libtpu: 0.0.40
codegen_flags: <defaults>
</compile_context>

<pallas_src>
import functools

import jax
import jax.numpy as jnp
from jax.experimental import pallas as pl
from jax.experimental.pallas import tpu as pltpu


def _round_up(x, m):
    return ((x + m - 1) // m) * m


def _vmem_budget_bytes():
    """Generation-aware VMEM budget: ~3/4 of physical, leaving compiler headroom."""
    try:
        cap = int(pltpu.get_tpu_info().vmem_capacity_bytes)
    except Exception:
        cap = 64 << 20          # conservative (v7x-sized) fallback
    cap = max(cap, 32 << 20)
    return (cap * 3) // 4


def _pick_row_tile(m, tile_m, per_row_bytes, avail_bytes):
    """Row tile: multiple of 8, >= 2 tiles whenever m > 8 (v7x dual TC), VMEM-capped."""
    if m <= 8:
        return int(m)
    cap = max(8, (int(avail_bytes) // max(int(per_row_bytes), 1)) // 8 * 8)
    target = min(tile_m, _round_up(pl.cdiv(m, 2), 8))   # at most ~m/2 -> >= 2 row tiles
    return int(max(8, min(target, cap)))


# --------------------------------------------------------------------------------------
# Kernels
# --------------------------------------------------------------------------------------
def _in_proj_kernel(x_ref, w_ref, b_ref, o_ref, *, compute_dtype):
    """out = x @ W + b (no activation). Grid = (row_tiles, n_tiles)."""
    acc = jnp.dot(x_ref[...].astype(compute_dtype),
                  w_ref[...].astype(compute_dtype),
                  preferred_element_type=jnp.float32)
    o_ref[...] = (acc + b_ref[...]).astype(o_ref.dtype)


def _mlp_resident_kernel(x_ref, w_in_ref, b_in_ref, w_ref, b_ref, o_ref, *,
                         num_layers, compute_dtype):
    """Whole (padded) weight stack resident in VMEM; layer loop statically unrolled.

    x_ref:    (TM, d_model)
    w_in_ref: (d_model, P)           b_in_ref: (1, P)     (f32 bias)
    w_ref:    (num_layers, P, P)     b_ref:    (num_layers, 1, P) (f32 biases)
    o_ref:    (TM, P)
    """
    h = jnp.dot(x_ref[...].astype(compute_dtype),
                w_in_ref[...].astype(compute_dtype),
                preferred_element_type=jnp.float32) + b_in_ref[...]
    for li in range(num_layers):                      # static unroll (num_layers <= 16 here)
        h = jnp.dot(h.astype(compute_dtype), w_ref[li].astype(compute_dtype),
                    preferred_element_type=jnp.float32)
        h = jnp.maximum(h + b_ref[li], 0.0)
    o_ref[...] = h.astype(o_ref.dtype)


def _hidden_stream_kernel(h0_ref, w_ref, b_ref, o_ref, h_ref, *, compute_dtype):
    """Grid = (row_tiles, num_layers). One (P, P) weight slab streamed per step.

    h0_ref: (TM, P) f32   w_ref: (P, P)   b_ref: (1, P) f32   o_ref: (TM, P)
    h_ref:  (TM, P) f32 scratch, carried across the layer ("arbitrary") axis.
    """
    l = pl.program_id(1)

    @pl.when(l == 0)
    def _():
        h_ref[...] = h0_ref[...]

    acc = jnp.dot(h_ref[...].astype(compute_dtype),
                  w_ref[...].astype(compute_dtype),
                  preferred_element_type=jnp.float32)
    h_ref[...] = jnp.maximum(acc + b_ref[...], 0.0)

    @pl.when(l == pl.num_programs(1) - 1)
    def _():
        o_ref[...] = h_ref[...].astype(o_ref.dtype)


# --------------------------------------------------------------------------------------
# Wrappers
# --------------------------------------------------------------------------------------
def _in_projection(x2, w_in_p, b_in_p, out_dtype, *, compute_dtype, tile_m, budget):
    """x2 (m, d_model) @ w_in_p (d_model, P) + b -> (m, P) in out_dtype."""
    m, d_model = x2.shape
    p = w_in_p.shape[1]
    csize = jnp.dtype(compute_dtype).itemsize
    o_bytes = jnp.dtype(out_dtype).itemsize

    # Column tile: largest multiple of 128 whose double-buffered weight slice fits half
    # the budget (p itself is already a multiple of 128).
    max_tn = ((budget // 2) // max(2 * d_model * csize, 1)) // 128 * 128
    tn = int(min(p, max(128, max_tn)))
    n_tiles = pl.cdiv(p, tn)

    per_row = 2 * d_model * csize + 2 * tn * o_bytes + tn * 4
    avail = budget - 2 * d_model * tn * csize - 2 * tn * 4
    tm = _pick_row_tile(m, tile_m, per_row, max(avail, per_row * 8))
    num_row_tiles = pl.cdiv(m, tm)

    need = (2 * tm * d_model * csize + 2 * d_model * tn * csize
            + 2 * tn * 4 + 2 * tm * tn * o_bytes)
    cost = pl.CostEstimate(
        flops=int(2 * m * d_model * p), transcendentals=0,
        bytes_accessed=int(x2.size * csize
                           + num_row_tiles * w_in_p.size * csize   # re-streamed per row tile
                           + b_in_p.size * 4 + m * p * o_bytes))

    return pl.pallas_call(
        functools.partial(_in_proj_kernel, compute_dtype=compute_dtype),
        out_shape=jax.ShapeDtypeStruct((m, p), out_dtype),
        grid_spec=pltpu.PrefetchScalarGridSpec(
            num_scalar_prefetch=0,
            grid=(num_row_tiles, n_tiles),
            in_specs=[
                pl.BlockSpec((tm, d_model), lambda i, n: (i, 0)),
                pl.BlockSpec((d_model, tn), lambda i, n: (0, n)),
                pl.BlockSpec((1, tn), lambda i, n: (0, n)),
            ],
            out_specs=pl.BlockSpec((tm, tn), lambda i, n: (i, n)),
        ),
        compiler_params=pltpu.CompilerParams(
            dimension_semantics=("parallel", "parallel"),
            vmem_limit_bytes=int(min(budget, max(2 * need, 32 << 20)))),
        cost_estimate=cost,
    )(x2, w_in_p, b_in_p)


def mlp_forward(x, w_in, b_in, w_stack, b_stack, *, tile_m=1024,
                compute_dtype=None, _force_streaming=False):
    """x: (..., d_model); returns (..., out_length). Matches nn.Linear semantics."""
    orig_shape = x.shape
    d_model = orig_shape[-1]
    out_length = w_in.shape[1]
    num_layers = int(w_stack.shape[0])
    if compute_dtype is None:
        # Pass jnp.bfloat16 on v6e/v7x for ~2-4x MXU throughput (accumulation and the
        # bias+ReLU epilogue stay f32 inside the kernels). Default is exact f32.
        compute_dtype = x.dtype

    x2 = x.reshape(-1, d_model).astype(compute_dtype)
    m = x2.shape[0]

    # Lane-dense hidden width: pad out_length to a multiple of 128. Padding is zeros so
    # padded activations stay exactly zero through bias+ReLU; stripped at the end.
    p = _round_up(out_length, 128)
    pad_n = p - out_length

    csize = jnp.dtype(compute_dtype).itemsize
    o_bytes = jnp.dtype(x.dtype).itemsize

    w_in_p = jnp.pad(w_in, ((0, 0), (0, pad_n))).astype(compute_dtype)
    b_in_p = jnp.pad(b_in, ((0, 0), (0, pad_n))).astype(jnp.float32)

    budget = _vmem_budget_bytes()

    def _finish(out_p):
        if pad_n:
            # TODO(synk): for heavily padded out_length a fused (tm, out_length) epilogue
            # store would avoid this extra HBM round trip.
            out_p = out_p[:, :out_length]
        return out_p.reshape(*orig_shape[:-1], out_length)

    # ------------------------------- num_layers == 0 ----------------------------------
    if num_layers == 0:
        return _finish(_in_projection(x2, w_in_p, b_in_p, x.dtype,
                                      compute_dtype=compute_dtype,
                                      tile_m=tile_m, budget=budget))

    w_stack_p = jnp.pad(w_stack, ((0, 0), (0, pad_n), (0, pad_n))).astype(compute_dtype)
    b_stack_p = jnp.pad(b_stack, ((0, 0), (0, pad_n))).astype(jnp.float32)
    b_stack_p = b_stack_p.reshape(num_layers, 1, p)

    # Resident-weight footprint (factor 2 = pipeline double buffering).
    resident_w_bytes = (2 * (d_model * p + num_layers * p * p) * csize
                        + 2 * (num_layers + 1) * p * 4)
    use_resident = (not _force_streaming and num_layers <= 16
                    and resident_w_bytes <= budget // 2)

    # ------------------------------- RESIDENT path ------------------------------------
    if use_resident:
        per_row = 2 * d_model * csize + 2 * p * o_bytes + 2 * p * 4
        tm = _pick_row_tile(m, tile_m, per_row, budget - resident_w_bytes)
        num_row_tiles = pl.cdiv(m, tm)

        flops = 2 * m * d_model * p + 2 * num_layers * m * p * p
        bytes_accessed = int(x2.size * csize
                             + (d_model * p + num_layers * p * p) * csize
                             + (num_layers + 1) * p * 4
                             + m * p * o_bytes)
        need = resident_w_bytes + per_row * tm

        out_p = pl.pallas_call(
            functools.partial(_mlp_resident_kernel, num_layers=num_layers,
                              compute_dtype=compute_dtype),
            out_shape=jax.ShapeDtypeStruct((m, p), x.dtype),
            grid_spec=pltpu.PrefetchScalarGridSpec(
                num_scalar_prefetch=0,
                grid=(num_row_tiles,),
                in_specs=[
                    pl.BlockSpec((tm, d_model), lambda i: (i, 0)),
                    pl.BlockSpec((d_model, p), lambda i: (0, 0)),
                    pl.BlockSpec((1, p), lambda i: (0, 0)),
                    pl.BlockSpec((num_layers, p, p), lambda i: (0, 0, 0)),
                    pl.BlockSpec((num_layers, 1, p), lambda i: (0, 0, 0)),
                ],
                out_specs=pl.BlockSpec((tm, p), lambda i: (i, 0)),
            ),
            compiler_params=pltpu.CompilerParams(
                dimension_semantics=("parallel",),
                vmem_limit_bytes=int(min(budget, max(2 * need, 32 << 20)))),
            cost_estimate=pl.CostEstimate(flops=int(flops), transcendentals=0,
                                          bytes_accessed=bytes_accessed),
        )(x2, w_in_p, b_in_p, w_stack_p, b_stack_p)
        return _finish(out_p)

    # ------------------------------- STREAMING path -----------------------------------
    # 1) input projection as its own call -> W_in is not held across the layer loop.
    h0 = _in_projection(x2, w_in_p, b_in_p, jnp.float32,
                        compute_dtype=compute_dtype, tile_m=tile_m, budget=budget)

    # 2) hidden layers: stream one (P, P) slab per (row_tile, layer) grid step.
    stream_bytes = 2 * p * p * csize + 4 * p * 4            # one slab (x2 buffers) + biases
    per_row = 2 * p * 4 + 2 * p * o_bytes + p * 4           # h0 in, out tile, f32 scratch
    avail = budget - stream_bytes
    if avail < per_row * 8:
        # TODO(synk): N-tile the streamed (P, P) slab (ping-pong h scratch) when one
        # double-buffered slab exceeds the per-generation VMEM budget (very large P on v7x).
        avail = per_row * 8
    tm = _pick_row_tile(m, tile_m, per_row, avail)
    num_row_tiles = pl.cdiv(m, tm)

    flops = 2 * num_layers * m * p * p
    bytes_accessed = int(m * p * 4                                     # h0 read
                         + num_row_tiles * num_layers * p * p * csize  # weights re-streamed
                         + num_layers * p * 4 + m * p * o_bytes)
    need = stream_bytes + per_row * tm

    out_p = pl.pallas_call(
        functools.partial(_hidden_stream_kernel, compute_dtype=compute_dtype),
        out_shape=jax.ShapeDtypeStruct((m, p), x.dtype),
        grid_spec=pltpu.PrefetchScalarGridSpec(
            num_scalar_prefetch=0,
            grid=(num_row_tiles, num_layers),
            in_specs=[
                pl.BlockSpec((tm, p), lambda i, l: (i, 0)),
                pl.BlockSpec((pl.Squeezed(), p, p), lambda i, l: (l, 0, 0)),
                pl.BlockSpec((pl.Squeezed(), 1, p), lambda i, l: (l, 0, 0)),
            ],
            out_specs=pl.BlockSpec((tm, p), lambda i, l: (i, 0)),
            scratch_shapes=[pltpu.VMEM((tm, p), jnp.float32)],
        ),
        compiler_params=pltpu.CompilerParams(
            dimension_semantics=("parallel", "arbitrary"),
            vmem_limit_bytes=int(min(budget, max(2 * need, 32 << 20)))),
        cost_estimate=pl.CostEstimate(flops=int(flops), transcendentals=0,
                                      bytes_accessed=bytes_accessed),
    )(h0, w_stack_p, b_stack_p)
    return _finish(out_p)


# --------------------------------------------------------------------------------------
# Params / reference
# --------------------------------------------------------------------------------------
def init_params(key, d_model, out_length, num_layers):
    """Deterministic params, mimicking nn.Linear's U(-1/sqrt(fan_in), +...)."""
    ks = jax.random.split(key, 2 * (num_layers + 1))
    bound_in = 1.0 / (d_model ** 0.5)
    w_in = jax.random.uniform(ks[0], (d_model, out_length), jnp.float32,
                              -bound_in, bound_in)
    b_in = jax.random.uniform(ks[1], (1, out_length), jnp.float32,
                              -bound_in, bound_in)
    bound_h = 1.0 / (out_length ** 0.5)
    w_layers, b_layers = [], []
    for li in range(num_layers):
        w_layers.append(jax.random.uniform(ks[2 + 2 * li],
                                           (out_length, out_length),
                                           jnp.float32, -bound_h, bound_h))
        b_layers.append(jax.random.uniform(ks[3 + 2 * li],
                                           (out_length,),
                                           jnp.float32, -bound_h, bound_h))
    if num_layers:
        w_stack = jnp.stack(w_layers, axis=0)
        b_stack = jnp.stack(b_layers, axis=0)
    else:
        w_stack = jnp.zeros((0, out_length, out_length), jnp.float32)
        b_stack = jnp.zeros((0, out_length), jnp.float32)
    return w_in, b_in, w_stack, b_stack


def mlp_reference(x, w_in, b_in, w_stack, b_stack):
    h = x @ w_in + b_in[0]
    for i in range(w_stack.shape[0]):
        h = jax.nn.relu(h @ w_stack[i] + b_stack[i])
    return h


if __name__ == "__main__":
    d_model, out_length, num_layers = 32, 16, 2
    batch, seq = 2, 8

    key = jax.random.PRNGKey(0)
    kx, kp = jax.random.split(key)
    x = jax.random.normal(kx, (batch, seq, d_model), jnp.float32)
    w_in, b_in, w_stack, b_stack = init_params(kp, d_model, out_length, num_layers)

    ref = mlp_reference(x, w_in, b_in, w_stack, b_stack)

    # Resident path (weights fit in VMEM; layer loop unrolled in-kernel).
    out = jax.block_until_ready(mlp_forward(x, w_in, b_in, w_stack, b_stack))
    assert out.shape == (batch, seq, out_length)
    assert jnp.allclose(out, ref, atol=1e-5, rtol=1e-5)

    # Streaming path (separate in-projection call + per-layer weight-slab streaming).
    out_s = jax.block_until_ready(
        mlp_forward(x, w_in, b_in, w_stack, b_stack, _force_streaming=True))
    assert jnp.allclose(out_s, ref, atol=1e-5, rtol=1e-5)

    # num_layers == 0: plain input projection (no activation).
    w0 = jnp.zeros((0, out_length, out_length), jnp.float32)
    b0 = jnp.zeros((0, out_length), jnp.float32)
    out0 = jax.block_until_ready(mlp_forward(x, w_in, b_in, w0, b0))
    ref0 = x.reshape(-1, d_model) @ w_in + b_in[0]
    assert jnp.allclose(out0.reshape(-1, out_length), ref0, atol=1e-5, rtol=1e-5)

    print("KERNEL_OK")
</pallas_src>

<mosaic_0001>
module attributes {stable_mosaic.version = 11 : i64} {
  func.func @_mlp_resident_kernel(%arg0: i32, %arg1: memref<8x32xf32, #tpu.memory_space<vmem>>, %arg2: memref<32x128xf32, #tpu.memory_space<vmem>>, %arg3: memref<1x128xf32, #tpu.memory_space<vmem>>, %arg4: memref<2x128x128xf32, #tpu.memory_space<vmem>>, %arg5: memref<2x1x128xf32, #tpu.memory_space<vmem>>, %arg6: memref<8x128xf32, #tpu.memory_space<vmem>>) attributes {dimension_semantics = [#tpu.dimension_semantics<parallel>], iteration_bounds = array<i64: 2>, scalar_prefetch = 0 : i64, scratch_operands = 0 : i64, tpu.core_type = #tpu.core_type<tc>, window_params = [{transform_indices = @transform_0, window_bounds = array<i64: 8, 32>}, {pipeline_mode = #tpu.pipeline_mode<synchronous>, transform_indices = @transform_1, window_bounds = array<i64: 32, 128>}, {pipeline_mode = #tpu.pipeline_mode<synchronous>, transform_indices = @transform_2, window_bounds = array<i64: 1, 128>}, {pipeline_mode = #tpu.pipeline_mode<synchronous>, transform_indices = @transform_3, window_bounds = array<i64: 2, 128, 128>}, {pipeline_mode = #tpu.pipeline_mode<synchronous>, transform_indices = @transform_4, window_bounds = array<i64: 2, 1, 128>}, {transform_indices = @transform_5, window_bounds = array<i64: 8, 128>}]} {
    %c0 = arith.constant 0 : index
    %c0_0 = arith.constant 0 : index
    %0 = vector.load %arg1[%c0, %c0_0] : memref<8x32xf32, #tpu.memory_space<vmem>>, vector<8x32xf32>
    %c0_1 = arith.constant 0 : index
    %c0_2 = arith.constant 0 : index
    %1 = vector.load %arg2[%c0_1, %c0_2] : memref<32x128xf32, #tpu.memory_space<vmem>>, vector<32x128xf32>
    %cst = arith.constant dense<0.000000e+00> : vector<8x128xf32>
    %2 = tpu.matmul %0, %1, %cst {dimension_numbers = #tpu.dot_dimension_numbers<[1], [0], [0], [1], [0, 0, 1, 1], [], []>} : vector<8x32xf32>, vector<32x128xf32>, vector<8x128xf32> -> vector<8x128xf32>
    %c0_3 = arith.constant 0 : index
    %c0_4 = arith.constant 0 : index
    %3 = vector.load %arg3[%c0_3, %c0_4] : memref<1x128xf32, #tpu.memory_space<vmem>>, vector<1x128xf32>
    %4 = vector.broadcast %3 : vector<1x128xf32> to vector<8x128xf32>
    %5 = arith.addf %2, %4 : vector<8x128xf32>
    %c0_5 = arith.constant 0 : index
    %c0_6 = arith.constant 0 : index
    %c0_7 = arith.constant 0 : index
    %6 = vector.load %arg4[%c0_5, %c0_6, %c0_7] : memref<2x128x128xf32, #tpu.memory_space<vmem>>, vector<1x128x128xf32>
    %7 = vector.shape_cast %6 : vector<1x128x128xf32> to vector<128x128xf32>
    %cst_8 = arith.constant dense<0.000000e+00> : vector<8x128xf32>
    %8 = tpu.matmul %5, %7, %cst_8 {dimension_numbers = #tpu.dot_dimension_numbers<[1], [0], [0], [1], [0, 0, 1, 1], [], []>} : vector<8x128xf32>, vector<128x128xf32>, vector<8x128xf32> -> vector<8x128xf32>
    %c0_9 = arith.constant 0 : index
    %c0_10 = arith.constant 0 : index
    %c0_11 = arith.constant 0 : index
    %9 = vector.load %arg5[%c0_9, %c0_10, %c0_11] : memref<2x1x128xf32, #tpu.memory_space<vmem>>, vector<1x1x128xf32>
    %10 = vector.shape_cast %9 : vector<1x1x128xf32> to vector<1x128xf32>
    %11 = vector.broadcast %10 : vector<1x128xf32> to vector<8x128xf32>
    %12 = arith.addf %8, %11 : vector<8x128xf32>
    %cst_12 = arith.constant 0.000000e+00 : f32
    %13 = vector.broadcast %cst_12 : f32 to vector<8x128xf32>
    %14 = arith.maximumf %12, %13 : vector<8x128xf32>
    %c1 = arith.constant 1 : index
    %c0_13 = arith.constant 0 : index
    %c0_14 = arith.constant 0 : index
    %15 = vector.load %arg4[%c1, %c0_13, %c0_14] : memref<2x128x128xf32, #tpu.memory_space<vmem>>, vector<1x128x128xf32>
    %16 = vector.shape_cast %15 : vector<1x128x128xf32> to vector<128x128xf32>
    %cst_15 = arith.constant dense<0.000000e+00> : vector<8x128xf32>
    %17 = tpu.matmul %14, %16, %cst_15 {dimension_numbers = #tpu.dot_dimension_numbers<[1], [0], [0], [1], [0, 0, 1, 1], [], []>} : vector<8x128xf32>, vector<128x128xf32>, vector<8x128xf32> -> vector<8x128xf32>
    %c1_16 = arith.constant 1 : index
    %c0_17 = arith.constant 0 : index
    %c0_18 = arith.constant 0 : index
    %18 = vector.load %arg5[%c1_16, %c0_17, %c0_18] : memref<2x1x128xf32, #tpu.memory_space<vmem>>, vector<1x1x128xf32>
    %19 = vector.shape_cast %18 : vector<1x1x128xf32> to vector<1x128xf32>
    %20 = vector.broadcast %19 : vector<1x128xf32> to vector<8x128xf32>
    %21 = arith.addf %17, %20 : vector<8x128xf32>
    %cst_19 = arith.constant 0.000000e+00 : f32
    %22 = vector.broadcast %cst_19 : f32 to vector<8x128xf32>
    %23 = arith.maximumf %21, %22 : vector<8x128xf32>
    %c0_20 = arith.constant 0 : index
    %c0_21 = arith.constant 0 : index
    %24 = vector.load %arg6[%c0_20, %c0_21] : memref<8x128xf32, #tpu.memory_space<vmem>>, vector<8x128xf32>
    tpu.vector_store %arg6[%c0_20, %c0_21], %23 {strides = array<i32>} : memref<8x128xf32, #tpu.memory_space<vmem>>, vector<8x128xf32>,
    return
  }
  func.func @transform_0(%arg0: i32) -> (i32, i32) {
    %c0_i32 = arith.constant 0 : i32
    %c0_i32_0 = arith.constant 0 : i32
    return %arg0, %c0_i32 : i32, i32
  }
  func.func @transform_1(%arg0: i32) -> (i32, i32) {
    %c0_i32 = arith.constant 0 : i32
    %c0_i32_0 = arith.constant 0 : i32
    %c0_i32_1 = arith.constant 0 : i32
    return %c0_i32, %c0_i32_0 : i32, i32
  }
  func.func @transform_2(%arg0: i32) -> (i32, i32) {
    %c0_i32 = arith.constant 0 : i32
    %c0_i32_0 = arith.constant 0 : i32
    %c0_i32_1 = arith.constant 0 : i32
    return %c0_i32, %c0_i32_0 : i32, i32
  }
  func.func @transform_3(%arg0: i32) -> (i32, i32, i32) {
    %c0_i32 = arith.constant 0 : i32
    %c0_i32_0 = arith.constant 0 : i32
    %c0_i32_1 = arith.constant 0 : i32
    %c0_i32_2 = arith.constant 0 : i32
    return %c0_i32, %c0_i32_0, %c0_i32_1 : i32, i32, i32
  }
  func.func @transform_4(%arg0: i32) -> (i32, i32, i32) {
    %c0_i32 = arith.constant 0 : i32
    %c0_i32_0 = arith.constant 0 : i32
    %c0_i32_1 = arith.constant 0 : i32
    %c0_i32_2 = arith.constant 0 : i32
    return %c0_i32, %c0_i32_0, %c0_i32_1 : i32, i32, i32
  }
  func.func @transform_5(%arg0: i32) -> (i32, i32) {
    %c0_i32 = arith.constant 0 : i32
    %c0_i32_0 = arith.constant 0 : i32
    return %arg0, %c0_i32 : i32, i32
  }
}

</mosaic_0001>

<bundles_post_ra>
// kernel: tpu_custom_call.1
= control target key start
LH: loop header
LB: loop body
LE: loop exit
PB: predicated region body
PF: predicated region fallthrough
CT: control target
= control target key end

     0   :  { %10 = vsyncpa [#allocation3], 0  ;;  %s1379_s0 = inlined_call_operand.hbm [shape: f32[16,32], index: 0, kind: input, shape index: {}]   ;;  %s1380_s1 = inlined_call_operand.hbm [shape: f32[32,128], index: 1, kind: input, shape index: {}]   ;;  %s1381_s2 = inlined_call_operand.vmem [shape: f32[1,128], index: 2, kind: input, shape index: {}]   ;;  %s1382_s3 = inlined_call_operand.hbm [shape: f32[2,128,128], index: 3, kind: input, shape index: {}]   ;;  %s1383_s4 = inlined_call_operand.vmem [shape: f32[2,1,128], index: 4, kind: input, shape index: {}]   ;;  %s1384_s5 = inlined_call_operand.hbm [shape: f32[16,128], index: 5, kind: output, shape index: {}]  }
   0x1   :  { %12 = vsyncpa [#allocation3 + $0x1], 0 }
   0x2   :  { %13 = vsyncpa [#allocation6], 0 }
   0x3   :  { %14 = vsyncpa [#allocation4], 0 }
   0x4   :  { %16 = vsyncpa [#allocation4 + $0x1], 0  ;;  %s1113_s18 = smov 0   ;;  %s1115_s19 = smov 0  }
   0x5   :  { %s1117_s20 = smov 0   ;;  %s1119_s21 = smov 0  }
   0x6 LB: > { %s1134_s22 = sadd.s32 4294967295, %s1072_s21   ;;  %s649_s23 = sadd.s32 4294967294, %s1072_s21   ;;  %s1072_s21 = sphi %s1119_s21, %s1404_s21   ;;  %s1068_s20 = sphi %s1117_s20, %s1403_s20   ;;  %s1064_s19 = sphi %s1115_s19, %s1402_s19   ;;  %s1060_s18 = sphi %s1113_s18, %s1401_s18  }
   0x7   : > { %p42_p0 = scmp.ne.s32.totalorder %s1064_s19, %s1060_s18  ;;  %p1385_p1 = scmp.eq.s32.totalorder %s1134_s22, 0 }
   0x8   : > { %p156_p3 = scmp.eq.s32.totalorder %s649_s23, 1  ;;  %p650_p5 = scmp.ge.s32.totalorder %s1072_s21, 1 }
   0x9   : > { %p1143_p4 = por %p1385_p1, %p42_p0  ;;  %p163_p7 = scmp.lt.s32.totalorder %s1072_s21, 3 }
   0xa   : > { %p1148_p6 = por %p156_p3, %p42_p0  ;;  %s1074_s27 = smov [#allocation5]  }
   0xb   : > { %s1388_s24 = scalar_select %p1143_p4, 1, 0 }
   0xc   : > { %s1389_s25 = scalar_select %p1148_p6, 1, 0 }
   0xd   : > { %p1153_p8 = pnand %p650_p5, %p163_p7  ;;  %s175_s28 = sshll.u32 %s1074_s27, 4  ;;  %s1157_s28 = int_to_ptr.vmem [resolvable:$true] %s175_s28 }
   0xe   : > { %s1075_s30 = smov [#allocation7]   ;;  %s916_s9 = scalar_lea.hbm %s1380_s1, 512 }
   0xf   : > { %p856_p9 = pneg %p1153_p8  ;;  %s191_s6 = sshll.u32 %s1075_s30, 4  ;;  %s1168_s6 = int_to_ptr.vmem [resolvable:$true] %s191_s6 }
  0x10   : > { %p917_p12 = scmp.ne.s32.totalorder %s1380_s1, %s916_s9  ;;  %p923_p5 = scmp.lt.u32.totalorder %s916_s9, %s1380_s1 }
  0x11   : > { %p1164_p11 = pnand %p856_p9, %p1385_p1 }
  0x13   : > { %p918_p13 = pneg %p1164_p11 }
  0x15   : > { %p919_p0 = pnand %p918_p13, %p917_p12 }
  0x17   : > { %p920_p3 = pneg %p919_p0 }
  0x19   : > { %p925_p7 = pnand %p923_p5, %p920_p3 }
  0x1b   : > { %928 = shalt.err (!%p925_p7)
}
  0x1c   : > { %s929_s14 = scalar_lea.vmem %s1157_s28, 512  ;;  %p937_p2 = scmp.lt.s32.totalorder %s1157_s28, %s1157_s28 }
  0x1d   : > { %p930_p9 = scmp.ne.s32.totalorder %s1157_s28, %s929_s14  ;;  %p938_p12 = scmp.lt.s32.totalorder %s929_s14, %s929_s14 }
  0x1f   : > { %p932_p10 = pnand %p930_p9, %p918_p13  ;;  %p939_p0 = por %p938_p12, %p937_p2 }
  0x21   : > { %p933_p1 = pneg %p932_p10 }
  0x23   : > { %p940_p6 = pnand %p939_p0, %p933_p1 }
  0x25   : > { %943 = shalt.err (!%p940_p6)
}
  0x26   : > { %s1076_s15 = smov 128   ;;  %s1077_s16 = smov 8  }
  0x27   : > { %859 = dma.hbm_to_vmem [thread:$0]  (!%p1164_p11), %s1380_s1, 512, %s1157_s28, [#allocation6], %s1076_s15, %s1076_s15, %s1077_s16  }
  0x28   : > { %s944_s7 = scalar_lea.hbm %s1382_s3, 4096 }
  0x29   : > { %p945_p2 = scmp.ne.s32.totalorder %s1382_s3, %s944_s7  ;;  %p951_p10 = scmp.lt.u32.totalorder %s944_s7, %s1382_s3 }
  0x2b   : > { %p947_p1 = pnand %p945_p2, %p918_p13 }
  0x2d   : > { %p948_p6 = pneg %p947_p1 }
  0x2f   : > { %p953_p3 = pnand %p951_p10, %p948_p6 }
  0x31   : > { %956 = shalt.err (!%p953_p3)
}
  0x32   : > { %s957_s28 = scalar_lea.vmem %s1168_s6, 4096  ;;  %p965_p12 = scmp.lt.s32.totalorder %s1168_s6, %s1168_s6 }
  0x33   : > { %p958_p5 = scmp.ne.s32.totalorder %s1168_s6, %s957_s28  ;;  %p966_p0 = scmp.lt.s32.totalorder %s957_s28, %s957_s28 }
  0x35   : > { %p960_p7 = pnand %p958_p5, %p918_p13  ;;  %p967_p2 = por %p966_p0, %p965_p12 }
  0x37   : > { %p961_p9 = pneg %p960_p7 }
  0x39   : > { %p968_p1 = pnand %p967_p2, %p961_p9 }
  0x3b   : > { %971 = shalt.err (!%p968_p1)
}
  0x3c   : > { %862 = dma.hbm_to_vmem [thread:$0]  (!%p1164_p11), %s1382_s3, 4096, %s1168_s6, [#allocation6], %s1076_s15, %s1076_s15, %s1077_s16  }
  0x3d   : > { %s1223_s14 = sadd.s32 1, %s1072_s21   ;;  %s29_s29 = sadd.s32 1, %s1068_s20 }
  0x3e   : > { %s26_s17 = ssub.s32 %s1072_s21, %s1223_s14  ;;  %p36_p13 = scmp.ne.s32.totalorder %s1068_s20, %s1064_s19 }
  0x3f   : > { %p27_p6 = scmp.eq.s32.totalorder %s26_s17, 0  ;;  %p37_p10 = scmp.eq.s32.totalorder %s1072_s21, 0 }
  0x40   : > { %p1392_p3 = scmp.eq.s32.totalorder %s1134_s22, 1  ;;  %p873_p7 = scmp.lt.s32.totalorder %s1072_s21, 2 }
  0x41   : > { %s1239_s27 = scalar_select %p27_p6, %s1068_s20, %s29_s29  }
  0x42   : > { %p1233_p5 = por %p1392_p3, %p36_p13  ;;  %p38_p9 = por %p37_p10, %p36_p13 }
  0x43   : > { %s208_s30 = sand.u32 1, %s1068_s20   ;;  %s655_s6 = sshll.u32 %s1072_s21, 7 }
  0x44   : > { %s1393_s23 = scalar_select %p1233_p5, 1, 0 }
  0x45   : > { %s654_s7 = sshll.u32 %s208_s30, 3  ;;  %s1246_s8 = scalar_lea.hbm %s1379_s0, %s655_s6 }
  0x46   : > { %s212_s9 = scalar_lea.vmem [#allocation2], %s654_s7  ;;  %p1250_p11 = pnand %p873_p7, %p38_p9 }
  0x47   : > { %s219_s10 = sshll.u32 %s212_s9, 4  ;;  %s209_s28 = scalar_lea.sflag [#allocation3], %s208_s30  ;;  %s1248_s10 = int_to_ptr.vmem [resolvable:$true] %s219_s10 }
  0x48   : > { %s972_s12 = scalar_lea.hbm %s1246_s8, 128  ;;  %p974_p0 = pneg %p1250_p11 }
  0x49   : > { %p973_p12 = scmp.ne.s32.totalorder %s1246_s8, %s972_s12  ;;  %s977_s17 = scalar_lea.hbm %s1379_s0, 256 }
  0x4a   : > { %p978_p13 = scmp.lt.u32.totalorder %s1246_s8, %s1379_s0  ;;  %p979_p6 = scmp.lt.u32.totalorder %s977_s17, %s972_s12 }
  0x4b   : > { %p975_p2 = pnand %p974_p0, %p973_p12  ;;  %p981_p3 = scmp.lt.u32.totalorder %s972_s12, %s1246_s8 }
  0x4c   : > { %p980_p10 = por %p979_p6, %p978_p13 }
  0x4d   : > { %p976_p1 = pneg %p975_p2 }
  0x4e   : > { %p982_p7 = por %p981_p3, %p980_p10 }
  0x50   : > { %p983_p9 = pnand %p982_p7, %p976_p1 }
  0x52   : > { %986 = shalt.err (!%p983_p9)
}
  0x53   : > { %s987_s30 = scalar_lea.vmem %s1248_s10, 128  ;;  %s1078_s15 = smov [#allocation2]  }
  0x54   : > { %p988_p12 = scmp.ne.s32.totalorder %s1248_s10, %s987_s30  ;;  %s992_s16 = sshll.u32 %s1078_s15, 4  ;;  %s993_s16 = int_to_ptr.vmem [resolvable:$false] %s992_s16 }
  0x55   : > { %s994_s9 = scalar_lea.vmem %s993_s16, 256  ;;  %p995_p4 = scmp.lt.s32.totalorder %s1248_s10, %s993_s16 }
  0x56   : > { %p990_p2 = pnand %p988_p12, %p974_p0  ;;  %p996_p13 = scmp.lt.s32.totalorder %s994_s9, %s987_s30 }
  0x58   : > { %p991_p5 = pneg %p990_p2  ;;  %p997_p6 = por %p996_p13, %p995_p4 }
  0x5a   : > { %p998_p10 = pnand %p997_p6, %p991_p5 }
  0x5c   : > { %1001 = shalt.err (!%p998_p10)
}
  0x5d   : > { %866 = dma.hbm_to_vmem [thread:$0]  (!%p1250_p11), %s1246_s8, 128, %s1248_s10, %s209_s28  }
  0x5e   : > { %228 = sbr.rel (%p1153_p8) target bundleno = 775 (0x307), region = 40  ;;  %s1282_s12 = sand.u32 (!%p1153_p8), 1, %s1064_s19  }
  0x5f   : > { %s657_s13 = sshll.u32 (!%p1153_p8), %s1282_s12, 3  ;;  %s231_s29 = scalar_lea.sflag (!%p1153_p8), [#allocation3], %s1282_s12 }
  0x60   : > { %s1288_s17 = scalar_lea.vmem (!%p1153_p8), [#allocation2], %s657_s13  ;;  %p1395_p4 = scmp.ne.s32.totalorder (!%p1153_p8), %s1388_s24, 0 }
  0x65   : > { %1047 = dma.done.wait (%p1395_p4), %s231_s29, 128  }
  0x66   : > { %1049 = vsyncadd (%p1395_p4), %s231_s29, 4294967168  ;;  %p1396_p5 = scmp.eq.s32.totalorder %s1134_s22, 0 }
  0x68   : > { %1051 = dma.done.wait (%p1396_p5), [#allocation6], 4608   ;;  %p1397_p8 = pmov %p1396_p5 }
  0x69   : > { %v1079_v0 = vmov 0.0|0.0   ;;  %vm1080_vm0 = vmmov 0   ;;  %v1081_v1 = vmov 0.0   ;;  %v270_v2 = vld [vmem:[#allocation5] sm:$0xff]  ;;  %v271_v3 = vld [vmem:[#allocation5 + $0x8] sm:$0xff]  ;;  %v272_v4 = vld [vmem:[#allocation5 + $0x10] sm:$0xff] }
  0x6a   : > { %1053 = vsyncadd (%p1397_p8), [#allocation6], 4294962688  ;;  %790 = vmatprep.subr.bf16.mxu0 %v1079_v0  ;;  %717 = vmatprep.mubr.msk.f32.mxu0 %vm1080_vm0, %v1081_v1  ;;  %v791_v5 = vpack.c.bf16 %v271_v3, %v270_v2  ;;  %v273_v6 = vld [vmem:[#allocation5 + $0x18] sm:$0xff]  ;;  %v355_v7 = vld [vmem:[#allocation7] sm:$0xff]  ;;  %vm281_vm1 = vcmask 261120   ;;  %s667_s7 = sshll.u32 %s1134_s22, 7 }
  0x6b   : > { %796 = vmatprep.subr.bf16.mxu1 %v1079_v0  ;;  %752 = vmatprep.mubr.msk.f32.mxu1 %vm1080_vm0, %v1081_v1  ;;  %v356_v8 = vld [vmem:[#allocation7 + $0x8] sm:$0xff]  ;;  %v357_v9 = vld [vmem:[#allocation7 + $0x10] sm:$0xff]  ;;  %v358_v10 = vld [vmem:[#allocation7 + $0x18] sm:$0xff]  ;;  %v794_v11 = vpack.c.bf16 %v273_v6, %v272_v4  ;;  %s268_s6 = scalar_lea.vmem [#allocation8], %s657_s13  ;;  %s1335_s9 = scalar_lea.hbm %s1384_s5, %s667_s7 }
  0x6c   : > { %792 = vmatpush3.bf16.msra.mxu0 %v791_v5  ;;  %v797_v12 = vpack.c.bf16 %v356_v8, %v355_v7  ;;  %v800_v13 = vpack.c.bf16 %v358_v10, %v357_v9  ;;  %v359_v14 = vld [vmem:[#allocation7 + $0x20] sm:$0xff]  ;;  %v360_v15 = vld [vmem:[#allocation7 + $0x28] sm:$0xff]  ;;  %v269_v16 = vld [vmem:[%s1288_s17] sm:$0xff]  ;;  %s560_s30 = sshll.u32 %s268_s6, 4  ;;  %s547_s29 = scalar_lea.sflag [#allocation4], %s1282_s12  ;;  %s1337_s30 = int_to_ptr.vmem [resolvable:$true] %s560_s30 }
  0x6d   : > { %793 = vmatprep.subr.bf16.mxu0 %v1079_v0  ;;  %v803_v17 = vpack.c.bf16 %v360_v15, %v359_v14  ;;  %v361_v18 = vld [vmem:[#allocation7 + $0x30] sm:$0xff]  ;;  %v362_v19 = vld [vmem:[#allocation7 + $0x38] sm:$0xff]  ;;  %v363_v21 = vld [vmem:[#allocation7 + $0x40] sm:$0xff]  ;;  %s1002_s17 = scalar_lea.vmem %s1337_s30, 128  ;;  %p1398_p0 = scmp.ne.s32.totalorder %s1393_s23, 0 }
  0x6e   : > { %798 = vmatpush3.bf16.msra.mxu1 %v797_v12  ;;  %v806_v20 = vpack.c.bf16 %v362_v19, %v361_v18  ;;  %v364_v22 = vld [vmem:[#allocation7 + $0x48] sm:$0xff]  ;;  %v365_v24 = vld [vmem:[#allocation7 + $0x50] sm:$0xff]  ;;  %v366_v25 = vld [vmem:[#allocation7 + $0x58] sm:$0xff]  ;;  %p1003_p11 = scmp.ne.s32.totalorder %s1337_s30, %s1002_s17  ;;  %s1082_s22 = smov [#allocation8]  }
  0x6f   : > { %799 = vmatprep.subr.bf16.mxu1 %v1079_v0  ;;  %v809_v23 = vpack.c.bf16 %v364_v22, %v363_v21  ;;  %v812_v26 = vpack.c.bf16 %v366_v25, %v365_v24  ;;  %v367_v27 = vld [vmem:[#allocation7 + $0x60] sm:$0xff]  ;;  %v368_v28 = vld [vmem:[#allocation7 + $0x68] sm:$0xff]  ;;  %v369_v30 = vld [vmem:[#allocation7 + $0x70] sm:$0xff]  ;;  %s1006_s13 = sshll.u32 %s1082_s22, 4  ;;  %s1007_s13 = int_to_ptr.vmem [resolvable:$false] %s1006_s13 }
  0x70   : > { %795 = vmatpush3.bf16.msra.mxu0 %v794_v11  ;;  %v815_v29 = vpack.c.bf16 %v368_v28, %v367_v27  ;;  %v370_v31 = vld [vmem:[#allocation7 + $0x78] sm:$0xff]  ;;  %v450_v33 = vld [vmem:[#allocation7 + $0x80] sm:$0xff]  ;;  %v451_v34 = vld [vmem:[#allocation7 + $0x88] sm:$0xff]  ;;  %p1004_p1 = pnand %p1003_p11, %p1398_p0  ;;  %s1008_s24 = scalar_lea.vmem %s1007_s13, 256 }
  0x71   : > { %820 = vmatprep.subr.bf16.mxu0 %v1079_v0  ;;  %v818_v32 = vpack.c.bf16 %v370_v31, %v369_v30  ;;  %v452_v35 = vld [vmem:[#allocation7 + $0x90] sm:$0xff]  ;;  %v821_v36 = vpack.c.bf16 %v451_v34, %v450_v33  ;;  %v453_v37 = vld [vmem:[#allocation7 + $0x98] sm:$0xff]  ;;  %v454_v39 = vld [vmem:[#allocation7 + $0xa0] sm:$0xff]  ;;  %p1009_p7 = scmp.lt.s32.totalorder %s1337_s30, %s1007_s13  ;;  %p1010_p9 = scmp.lt.s32.totalorder %s1008_s24, %s1002_s17 }
  0x72   : > { %801 = vmatpush3.bf16.msra.mxu1 %v800_v13  ;;  %v824_v38 = vpack.c.bf16 %v453_v37, %v452_v35  ;;  %v455_v40 = vld [vmem:[#allocation7 + $0xa8] sm:$0xff]  ;;  %v456_v42 = vld [vmem:[#allocation7 + $0xb0] sm:$0xff]  ;;  %v457_v43 = vld [vmem:[#allocation7 + $0xb8] sm:$0xff]  ;;  %p1005_p3 = pneg %p1004_p1 }
  0x73   : > { %718 = vmatmul.mubr.msk.f32.vlgmr.msra.gmra.mrb[0].mxu0 %vm281_vm1, %v269_v16  ;;  %802 = vmatprep.subr.bf16.mxu1 %v1079_v0  ;;  %v827_v41 = vpack.c.bf16 %v455_v40, %v454_v39  ;;  %v830_v44 = vpack.c.bf16 %v457_v43, %v456_v42  ;;  %v458_v45 = vld [vmem:[#allocation7 + $0xc0] sm:$0xff]  ;;  %v459_v46 = vld [vmem:[#allocation7 + $0xc8] sm:$0xff]  ;;  %v460_v48 = vld [vmem:[#allocation7 + $0xd0] sm:$0xff]  ;;  %p1011_p12 = por %p1010_p9, %p1009_p7 }
  0x74   : > { %787 = vmatprep.mubr.msk.f32.mxu0 %vm1080_vm0, %v1081_v1  ;;  %822 = vmatpush3.bf16.msra.mxu0 %v821_v36  ;;  %v833_v47 = vpack.c.bf16 %v459_v46, %v458_v45  ;;  %v461_v49 = vld [vmem:[#allocation7 + $0xd8] sm:$0xff]  ;;  %v462_v51 = vld [vmem:[#allocation7 + $0xe0] sm:$0xff]  ;;  %v463_v52 = vld [vmem:[#allocation7 + $0xe8] sm:$0xff] }
  0x75   : > { %823 = vmatprep.subr.bf16.mxu0 %v1079_v0  ;;  %v836_v50 = vpack.c.bf16 %v461_v49, %v460_v48  ;;  %v839_v53 = vpack.c.bf16 %v463_v52, %v462_v51  ;;  %v661_v54 = vld [vmem:[%s1381_s2] ss:$0 sm:$0xff]  ;;  %v465_v59 = vld [vmem:[#allocation7 + $0xf8] sm:$0xff]  ;;  %v665_v2 = vld [vmem:[%s1383_s4 + $0x1] ss:$0 sm:$0xff]  ;;  %p1012_p2 = pnand %p1011_p12, %p1005_p3 }
  0x76   : > { %804 = vmatpush3.bf16.msra.mxu1 %v803_v17  ;;  %v464_v58 = vld [vmem:[#allocation7 + $0xf0] sm:$0xff] }
  0x77   : > { %805 = vmatprep.subr.bf16.mxu1 %v1079_v0  ;;  %v842_v60 = vpack.c.bf16 %v465_v59, %v464_v58  ;;  %v663_v61 = vld [vmem:[%s1383_s4] ss:$0 sm:$0xff] }
  0x78   : > { %825 = vmatpush3.bf16.msra.mxu0 %v824_v38 }
  0x79   : > { %826 = vmatprep.subr.bf16.mxu0 %v1079_v0 }
  0x7a   : > { %807 = vmatpush3.bf16.msra.mxu1 %v806_v20 }
  0x7b   : > { %808 = vmatprep.subr.bf16.mxu1 %v1079_v0 }
  0x7c   : > { %828 = vmatpush3.bf16.msra.mxu0 %v827_v41 }
  0x7d   : > { %829 = vmatprep.subr.bf16.mxu0 %v1079_v0 }
  0x7e   : > { %810 = vmatpush3.bf16.msra.mxu1 %v809_v23 }
  0x7f   : > { %811 = vmatprep.subr.bf16.mxu1 %v1079_v0 }
  0x80   : > { %831 = vmatpush3.bf16.msra.mxu0 %v830_v44 }
  0x81   : > { %832 = vmatprep.subr.bf16.mxu0 %v1079_v0 }
  0x82   : > { %813 = vmatpush3.bf16.msra.mxu1 %v812_v26 }
  0x83   : > { %814 = vmatprep.subr.bf16.mxu1 %v1079_v0 }
  0x84   : > { %834 = vmatpush3.bf16.msra.mxu0 %v833_v47 }
  0x85   : > { %835 = vmatprep.subr.bf16.mxu0 %v1079_v0 }
  0x86   : > { %816 = vmatpush3.bf16.msra.mxu1 %v815_v29 }
  0x87   : > { %817 = vmatprep.subr.bf16.mxu1 %v1079_v0 }
  0x88   : > { %837 = vmatpush3.bf16.msra.mxu0 %v836_v50 }
  0x89   : > { %838 = vmatprep.subr.bf16.mxu0 %v1079_v0 }
  0x8a   : > { %819 = vmatpush3.bf16.msra.mxu1 %v818_v32 }
  0x8c   : > { %840 = vmatpush3.bf16.msra.mxu0 %v839_v53 }
  0x8d   : > { %841 = vmatprep.subr.bf16.mxu0 %v1079_v0 }
  0x90   : > { %843 = vmatpush3.bf16.msra.mxu0 %v842_v60 }
 0x146   : > { %v351_v55 = vpop.f32.mrb[0].mxu0 }
 0x147   : > { %v352_v56 = vadd.f32 %v661_v54, %v351_v55  ;;  %v719_v57 = vpop.f32.mrb[1].mxu0 }
 0x149   : > { %753 = vmatmul.mubr.f32.vlgmr.msra.gmra.mrb[0].mxu1 %v352_v56 }
 0x21c   : > { %v444_v62 = vpop.f32.mrb[0].mxu1 }
 0x21d   : > { %v445_v63 = vadd.f32 %v663_v61, %v444_v62  ;;  %v754_v0 = vpop.f32.mrb[1].mxu1 }
 0x21f   : > { %v448_v1 = vmax.f32 %v445_v63, 0.0 }
 0x221   : > { %788 = vmatmul.mubr.f32.vlgmr.msra.gmra.mrb[2].mxu0 %v448_v1 }
 0x2f4   : > { %v540_v3 = vpop.f32.mrb[2].mxu0 }
 0x2f5   : > { %v541_v4 = vadd.f32 %v665_v2, %v540_v3  ;;  %v789_v5 = vpop.f32.mrb[3].mxu0 }
 0x2f7   : > { %v544_v6 = vmax.f32 %v541_v4, 0.0 }
 0x2f9   : > { %545 = vst [vmem:[%s268_s6] sm:$0xff] %v544_v6 }
 0x2fa   : > { %1015 = shalt.err (!%p1012_p2)
}
 0x2fb   : > { %s1016_s12 = scalar_lea.hbm %s1335_s9, 128  ;;  %s1020_s10 = scalar_lea.hbm %s1384_s5, 256 }
 0x2fc   : > { %p1017_p13 = scmp.ne.s32.totalorder %s1335_s9, %s1016_s12  ;;  %p1021_p4 = scmp.lt.u32.totalorder %s1335_s9, %s1384_s5 }
 0x2fd   : > { %p1022_p5 = scmp.lt.u32.totalorder %s1020_s10, %s1016_s12  ;;  %p1024_p11 = scmp.lt.u32.totalorder %s1016_s12, %s1335_s9 }
 0x2fe   : > { %p1018_p6 = pnand %p1017_p13, %p1398_p0 }
 0x2ff   : > { %p1023_p8 = por %p1022_p5, %p1021_p4 }
 0x300   : > { %p1019_p10 = pneg %p1018_p6 }
 0x301   : > { %p1025_p1 = por %p1024_p11, %p1023_p8 }
 0x303   : > { %p1026_p3 = pnand %p1025_p1, %p1019_p10 }
 0x305   : > { %1029 = shalt.err (!%p1026_p3)
}
 0x306   : > { %854 = dma.vmem_to_hbm [thread:$0]  (%p1398_p0), %s1337_s30, 128, %s1335_s9, %s547_s29  }
 0x307 PF: > { %s572_s7 = sand.u32 1, %s1060_s18   ;;  %p1399_p7 = scmp.ne.s32.totalorder %s1389_s25, 0 }
 0x308   : > { %p1400_p9 = scmp.ge.s32.totalorder %s1072_s21, 2  ;;  %s573_s6 = scalar_lea.sflag [#allocation4], %s572_s7 }
 0x30a   : > { %p868_p12 = pnand %p1400_p9, %p1399_p7 }
 0x30c   : > { %1055 = dma.done.wait (!%p868_p12), %s573_s6, 128  }
 0x30d   : > { %1057 = vsyncadd (!%p868_p12), %s573_s6, 4294967168  ;;  %p19_p2 = scmp.ge.s32.totalorder %s1223_s14, 4   ;;  %s1401_s18 = smov %s1064_s19 }
 0x30e   : > { %s1402_s19 = smov %s1068_s20  ;;  %s1403_s20 = smov %s1239_s27 }
 0x30f   : > { %s1404_s21 = smov %s1223_s14  ;;  %21 = sbr.rel (!%p19_p2) target bundleno = 6 (0x6), region = 95 }
 0x316   :  { %578 = vsyncpa [#allocation3], 1 }
 0x317   :  { %580 = vsyncpa [#allocation3 + $0x1], 1 }
 0x318   :  { %581 = vsyncpa [#allocation6], 1 }
 0x319   :  { %582 = vsyncpa [#allocation4], 1 }
 0x31a   :  { %584 = vsyncpa [#allocation4 + $0x1], 1 }

</bundles_post_ra>
